<compile_context>
chip_gen: v5e
topology: v5e:2x2
jax: 0.10.0
libtpu: 0.0.40
codegen_flags: <defaults>
</compile_context>

<pallas_src>
import functools

import jax
import jax.numpy as jnp
from jax.experimental import pallas as pl
from jax.experimental.pallas import tpu as pltpu

# ----------------------- static configuration --------------------------------
LAGS = 2            # self.lags
LATENT = 4          # latent_size (x_dim)
HIDDEN = 32         # hidden_dim of each per-latent MLP
SLOPE = 0.2         # LeakyReLU negative slope
LD = LAGS * LATENT          # flattened lag width             = 8
HD = LATENT * HIDDEN        # fused (block-diag) hidden width = 128


def _round_up(n, m):
    return ((n + m - 1) // m) * m


def _cdiv(a, b):
    return -(-a // b)


# ----------------------------- Pallas kernel ----------------------------------
def np_prior_kernel(x_ref, w0l_ref, w0s_ref, b0_ref, d0_ref,
                    w1_ref, b1_ref, w2_ref, b2_ref, wo_ref, bo_ref,
                    res_ref, ld_ref, *, t_tile, length):
    # x_ref : (1, length_pad + LAGS, D)  one batch element's full (padded) sequence
    # w0l   : (LAGS, D, HD)   per-lag input weights
    # w0s   : (D, HD)         block-structured x_t weights
    # b0/b1/b2 : (1, HD)      d0: (1, HD) tangent seed (dz/dx_t_i per block)
    # w1/w2 : (HD, HD)        block-diagonal hidden weights (pre-transposed)
    # wo    : (HD, D)         block-structured output weight; bo: (1, D)
    # res_ref : (1, t_tile, D)   ld_ref : (1, t_tile, 1)
    t = pl.program_id(1)
    t0 = pl.multiple_of(t * t_tile, 8)

    one = jnp.float32(1.0)
    slope = jnp.float32(SLOPE)

    # ---- fused layer 0: window build via LAGS+1 time-shifted skinny matmuls ----
    x_t = x_ref[0, pl.ds(t0 + LAGS, t_tile), :]                      # (T, D)
    z = jnp.dot(x_t, w0s_ref[...], preferred_element_type=jnp.float32)
    for l in range(LAGS):                                            # static unroll
        x_l = x_ref[0, pl.ds(t0 + l, t_tile), :]                     # (T, D) lag l
        z = z + jnp.dot(x_l, w0l_ref[l], preferred_element_type=jnp.float32)
    z = z + b0_ref[...]
    gate = jnp.where(z > 0, one, slope)
    a = gate * z                       # activations           (T, HD)
    d = gate * d0_ref[...]             # forward-mode tangent  (T, HD)

    # ---- hidden layers: two matmuls against the SAME weight (no concat) ----
    for w_ref, b_ref in ((w1_ref, b1_ref), (w2_ref, b2_ref)):
        za = jnp.dot(a, w_ref[...], preferred_element_type=jnp.float32) + b_ref[...]
        zd = jnp.dot(d, w_ref[...], preferred_element_type=jnp.float32)
        gate = jnp.where(za > 0, one, slope)
        a = gate * za
        d = gate * zd

    # ---- block-structured output layer ----
    res = jnp.dot(a, wo_ref[...], preferred_element_type=jnp.float32) + bo_ref[...]
    dout = jnp.dot(d, wo_ref[...], preferred_element_type=jnp.float32)   # (T, D)

    # logdet; padded tail rows (global row >= length) masked so no -inf/NaN
    # is ever written to HBM (they are sliced off in the wrapper anyway).
    row = t0 + jax.lax.broadcasted_iota(jnp.int32, (t_tile, 1), 0)
    abs_d = jnp.where(row < length, jnp.abs(dout), one)
    ld = jnp.sum(jnp.log(abs_d), axis=-1, keepdims=True)                 # (T, 1)

    res_ref[0] = res
    ld_ref[0] = ld


# ---------------------- block-diagonal weight fusion ---------------------------
def _fuse_params(params):
    """Stack the D private MLPs into block-diag / block-structured fused weights."""
    D, H = LATENT, HIDDEN

    w0 = params["W0"].astype(jnp.float32)                 # (D, H, LD+1)
    # lag weights: w0_lag[l, j, i*H+h] = W0[i, h, l*D + j]
    w0_lag = jnp.transpose(w0[:, :, :LD], (2, 0, 1)).reshape(LAGS, D, HD)
    # x_t weights: w0_self[j, i*H+h] = W0[i, h, LD] if j == i else 0
    w0s_diag = w0[:, :, LD]                                # (D, H)
    w0_self = (jnp.zeros((D, D, H), jnp.float32)
               .at[jnp.arange(D), jnp.arange(D), :].set(w0s_diag)).reshape(D, HD)
    b0f = params["b0"].astype(jnp.float32).reshape(1, HD)
    d0f = w0s_diag.reshape(1, HD)                          # tangent seed per block

    def blockdiag(w):                                      # (D, Hout, Hin) -> (HD, HD), transposed
        wt = jnp.transpose(w.astype(jnp.float32), (0, 2, 1))          # (D, Hin, Hout)
        return (jnp.zeros((D, H, D, H), jnp.float32)
                .at[jnp.arange(D), :, jnp.arange(D), :].set(wt)).reshape(HD, HD)

    W1f = blockdiag(params["W1"]); b1f = params["b1"].astype(jnp.float32).reshape(1, HD)
    W2f = blockdiag(params["W2"]); b2f = params["b2"].astype(jnp.float32).reshape(1, HD)

    WOf = (jnp.zeros((D, H, D), jnp.float32)
           .at[jnp.arange(D), :, jnp.arange(D)].set(params["WO"].astype(jnp.float32))
           ).reshape(HD, D)
    bof = params["bo"].astype(jnp.float32).reshape(1, D)
    return w0_lag, w0_self, b0f, d0f, W1f, b1f, W2f, b2f, WOf, bof


# ------------------------------ wrapper ---------------------------------------
def np_transition_prior_forward(x, params, mask=None, tile_rows=1024):
    """x: (B, lags+length, D) -> (residuals (B,length,D), logabsdet (B,length))."""
    # TODO(synk): mask != None path (per-latent masking of the lagged inputs) not wired in.
    assert mask is None
    B, LL, D = x.shape
    assert D == LATENT
    length = LL - LAGS
    assert length > 0

    # Balanced time tiling (rows multiple of 8); keep >= 2 total grid steps when
    # possible so a dual-TensorCore chip (v7x) can shard the parallel axes.
    n_t = max(1, _cdiv(length, tile_rows))
    if B * n_t < 2:
        n_t = max(1, min(2, _cdiv(length, 8)))
    t_tile = _round_up(_cdiv(length, n_t), 8)
    n_t = _cdiv(length, t_tile)
    length_pad = n_t * t_tile
    ll_pad = length_pad + LAGS

    x32 = x.astype(jnp.float32)
    if ll_pad != LL:                       # tiny zero pad along time (tail tile only)
        x32 = jnp.pad(x32, ((0, 0), (0, ll_pad - LL), (0, 0)))

    weights = _fuse_params(params)

    def const_spec(arr):                   # weights: same block every step -> DMA'd once
        nd = arr.ndim
        return pl.BlockSpec(arr.shape, lambda b, t: (0,) * nd)

    in_specs = [pl.BlockSpec((1, ll_pad, D), lambda b, t: (b, 0, 0))]
    in_specs += [const_spec(w) for w in weights]
    out_specs = [pl.BlockSpec((1, t_tile, D), lambda b, t: (b, t, 0)),
                 pl.BlockSpec((1, t_tile, 1), lambda b, t: (b, t, 0))]

    kernel = functools.partial(np_prior_kernel, t_tile=t_tile, length=length)

    res_pad, ld_pad = pl.pallas_call(
        kernel,
        grid=(B, n_t),
        in_specs=in_specs,
        out_specs=out_specs,
        out_shape=(jax.ShapeDtypeStruct((B, length_pad, D), jnp.float32),
                   jax.ShapeDtypeStruct((B, length_pad, 1), jnp.float32)),
        compiler_params=pltpu.CompilerParams(
            dimension_semantics=("parallel", "parallel")),
    )(x32, *weights)

    if length_pad != length:
        res_pad = res_pad[:, :length, :]
        ld_pad = ld_pad[:, :length, :]
    return res_pad, ld_pad[:, :, 0]


# ------------------------- deterministic parameter init -----------------------
def init_params(key):
    """nn.Linear-style uniform init (bound = 1/sqrt(fan_in)), stacked over LATENT nets."""
    def uinit(k, shape, fan_in):
        b = 1.0 / jnp.sqrt(jnp.float32(fan_in))
        return jax.random.uniform(k, shape, jnp.float32, -b, b)

    ks = jax.random.split(key, 8)
    return {
        "W0": uinit(ks[0], (LATENT, HIDDEN, LD + 1), LD + 1),
        "b0": uinit(ks[1], (LATENT, HIDDEN), LD + 1),
        "W1": uinit(ks[2], (LATENT, HIDDEN, HIDDEN), HIDDEN),
        "b1": uinit(ks[3], (LATENT, HIDDEN), HIDDEN),
        "W2": uinit(ks[4], (LATENT, HIDDEN, HIDDEN), HIDDEN),
        "b2": uinit(ks[5], (LATENT, HIDDEN), HIDDEN),
        "WO": uinit(ks[6], (LATENT, HIDDEN), HIDDEN),   # final layer weight (1, H) squeezed
        "bo": uinit(ks[7], (LATENT, 1), HIDDEN),
    }


# ----------------------------- pure-JAX reference ------------------------------
def ref_forward(x, params):
    B, LL, D = x.shape
    length = LL - LAGS
    idx = jnp.arange(length)[:, None] + jnp.arange(LAGS + 1)[None, :]
    bx = x[:, idx, :].reshape(-1, LAGS + 1, D)
    xl = bx[:, :-1].reshape(-1, LD)
    xt = bx[:, -1]

    lrelu = lambda z: jnp.where(z > 0, z, SLOPE * z)
    res, ld = [], jnp.zeros((xl.shape[0],), jnp.float32)
    for i in range(D):
        W0, b0 = params["W0"][i], params["b0"][i]
        W1, b1 = params["W1"][i], params["b1"][i]
        W2, b2 = params["W2"][i], params["b2"][i]
        WO, bo = params["WO"][i], params["bo"][i]

        def f(v):
            a = lrelu(W0 @ v + b0)
            a = lrelu(W1 @ a + b1)
            a = lrelu(W2 @ a + b2)
            return jnp.dot(WO, a) + bo[0]

        inp = jnp.concatenate([xl, xt[:, i:i + 1]], axis=-1)
        out = jax.vmap(f)(inp)
        grads = jax.vmap(jax.grad(f))(inp)
        ld = ld + jnp.log(jnp.abs(grads[:, -1]))
        res.append(out[:, None])
    residuals = jnp.concatenate(res, axis=-1).reshape(B, length, D)
    return residuals, ld.reshape(B, length)


# ----------------------------------- main --------------------------------------
if __name__ == "__main__":
    key = jax.random.PRNGKey(0)
    k_x, k_p = jax.random.split(key)

    B, LENGTH = 2, 8
    x = jax.random.normal(k_x, (B, LAGS + LENGTH, LATENT), jnp.float32)
    params = init_params(k_p)

    fwd = jax.jit(np_transition_prior_forward)
    residuals, logabsdet = fwd(x, params)
    jax.block_until_ready((residuals, logabsdet))

    ref_res, ref_ld = ref_forward(x, params)
    assert residuals.shape == (B, LENGTH, LATENT)
    assert logabsdet.shape == (B, LENGTH)
    assert jnp.allclose(residuals, ref_res, rtol=1e-3, atol=1e-3)
    assert jnp.allclose(logabsdet, ref_ld, rtol=1e-3, atol=1e-3)

    print("KERNEL_OK")
</pallas_src>

<mosaic_0001>
module attributes {stable_mosaic.version = 11 : i64} {
  func.func @np_prior_kernel(%arg0: i32, %arg1: i32, %arg2: memref<1x10x4xf32, #tpu.memory_space<vmem>>, %arg3: memref<2x4x128xf32, #tpu.memory_space<vmem>>, %arg4: memref<4x128xf32, #tpu.memory_space<vmem>>, %arg5: memref<1x128xf32, #tpu.memory_space<vmem>>, %arg6: memref<1x128xf32, #tpu.memory_space<vmem>>, %arg7: memref<128x128xf32, #tpu.memory_space<vmem>>, %arg8: memref<1x128xf32, #tpu.memory_space<vmem>>, %arg9: memref<128x128xf32, #tpu.memory_space<vmem>>, %arg10: memref<1x128xf32, #tpu.memory_space<vmem>>, %arg11: memref<128x4xf32, #tpu.memory_space<vmem>>, %arg12: memref<1x4xf32, #tpu.memory_space<vmem>>, %arg13: memref<1x8x4xf32, #tpu.memory_space<vmem>>, %arg14: memref<1x8x1xf32, #tpu.memory_space<vmem>>) attributes {dimension_semantics = [#tpu.dimension_semantics<parallel>, #tpu.dimension_semantics<parallel>], iteration_bounds = array<i64: 2, 1>, scalar_prefetch = 0 : i64, scratch_operands = 0 : i64, tpu.core_type = #tpu.core_type<tc>, window_params = [{transform_indices = @transform_0, window_bounds = array<i64: 1, 10, 4>}, {pipeline_mode = #tpu.pipeline_mode<synchronous>, transform_indices = @transform_1, window_bounds = array<i64: 2, 4, 128>}, {pipeline_mode = #tpu.pipeline_mode<synchronous>, transform_indices = @transform_2, window_bounds = array<i64: 4, 128>}, {pipeline_mode = #tpu.pipeline_mode<synchronous>, transform_indices = @transform_3, window_bounds = array<i64: 1, 128>}, {pipeline_mode = #tpu.pipeline_mode<synchronous>, transform_indices = @transform_4, window_bounds = array<i64: 1, 128>}, {pipeline_mode = #tpu.pipeline_mode<synchronous>, transform_indices = @transform_5, window_bounds = array<i64: 128, 128>}, {pipeline_mode = #tpu.pipeline_mode<synchronous>, transform_indices = @transform_6, window_bounds = array<i64: 1, 128>}, {pipeline_mode = #tpu.pipeline_mode<synchronous>, transform_indices = @transform_7, window_bounds = array<i64: 128, 128>}, {pipeline_mode = #tpu.pipeline_mode<synchronous>, transform_indices = @transform_8, window_bounds = array<i64: 1, 128>}, {pipeline_mode = #tpu.pipeline_mode<synchronous>, transform_indices = @transform_9, window_bounds = array<i64: 128, 4>}, {pipeline_mode = #tpu.pipeline_mode<synchronous>, transform_indices = @transform_10, window_bounds = array<i64: 1, 4>}, {transform_indices = @transform_11, window_bounds = array<i64: 1, 8, 4>}, {transform_indices = @transform_12, window_bounds = array<i64: 1, 8, 1>}]} {
    %c8_i32 = arith.constant 8 : i32
    %0 = arith.muli %arg1, %c8_i32 : i32
    %1 = tpu.assume_multiple %0, 8 : i32
    %c2_i32 = arith.constant 2 : i32
    %2 = arith.addi %1, %c2_i32 : i32
    %c0 = arith.constant 0 : index
    %3 = arith.index_cast %2 : i32 to index
    %c0_0 = arith.constant 0 : index
    %4 = vector.load %arg2[%c0, %3, %c0_0] : memref<1x10x4xf32, #tpu.memory_space<vmem>>, vector<1x8x4xf32>
    %5 = vector.shape_cast %4 : vector<1x8x4xf32> to vector<8x4xf32>
    %c0_1 = arith.constant 0 : index
    %c0_2 = arith.constant 0 : index
    %6 = vector.load %arg4[%c0_1, %c0_2] : memref<4x128xf32, #tpu.memory_space<vmem>>, vector<4x128xf32>
    %cst = arith.constant dense<0.000000e+00> : vector<8x128xf32>
    %7 = tpu.matmul %5, %6, %cst {dimension_numbers = #tpu.dot_dimension_numbers<[1], [0], [0], [1], [0, 0, 1, 1], [], []>} : vector<8x4xf32>, vector<4x128xf32>, vector<8x128xf32> -> vector<8x128xf32>
    %c0_i32 = arith.constant 0 : i32
    %8 = arith.addi %1, %c0_i32 : i32
    %c0_3 = arith.constant 0 : index
    %9 = arith.index_cast %8 : i32 to index
    %c0_4 = arith.constant 0 : index
    %10 = vector.load %arg2[%c0_3, %9, %c0_4] : memref<1x10x4xf32, #tpu.memory_space<vmem>>, vector<1x8x4xf32>
    %11 = vector.shape_cast %10 : vector<1x8x4xf32> to vector<8x4xf32>
    %c0_5 = arith.constant 0 : index
    %c0_6 = arith.constant 0 : index
    %c0_7 = arith.constant 0 : index
    %12 = vector.load %arg3[%c0_5, %c0_6, %c0_7] : memref<2x4x128xf32, #tpu.memory_space<vmem>>, vector<1x4x128xf32>
    %13 = vector.shape_cast %12 : vector<1x4x128xf32> to vector<4x128xf32>
    %cst_8 = arith.constant dense<0.000000e+00> : vector<8x128xf32>
    %14 = tpu.matmul %11, %13, %cst_8 {dimension_numbers = #tpu.dot_dimension_numbers<[1], [0], [0], [1], [0, 0, 1, 1], [], []>} : vector<8x4xf32>, vector<4x128xf32>, vector<8x128xf32> -> vector<8x128xf32>
    %15 = arith.addf %7, %14 : vector<8x128xf32>
    %c1_i32 = arith.constant 1 : i32
    %16 = arith.addi %1, %c1_i32 : i32
    %c0_9 = arith.constant 0 : index
    %17 = arith.index_cast %16 : i32 to index
    %c0_10 = arith.constant 0 : index
    %18 = vector.load %arg2[%c0_9, %17, %c0_10] : memref<1x10x4xf32, #tpu.memory_space<vmem>>, vector<1x8x4xf32>
    %19 = vector.shape_cast %18 : vector<1x8x4xf32> to vector<8x4xf32>
    %c1 = arith.constant 1 : index
    %c0_11 = arith.constant 0 : index
    %c0_12 = arith.constant 0 : index
    %20 = vector.load %arg3[%c1, %c0_11, %c0_12] : memref<2x4x128xf32, #tpu.memory_space<vmem>>, vector<1x4x128xf32>
    %21 = vector.shape_cast %20 : vector<1x4x128xf32> to vector<4x128xf32>
    %cst_13 = arith.constant dense<0.000000e+00> : vector<8x128xf32>
    %22 = tpu.matmul %19, %21, %cst_13 {dimension_numbers = #tpu.dot_dimension_numbers<[1], [0], [0], [1], [0, 0, 1, 1], [], []>} : vector<8x4xf32>, vector<4x128xf32>, vector<8x128xf32> -> vector<8x128xf32>
    %23 = arith.addf %15, %22 : vector<8x128xf32>
    %c0_14 = arith.constant 0 : index
    %c0_15 = arith.constant 0 : index
    %24 = vector.load %arg5[%c0_14, %c0_15] : memref<1x128xf32, #tpu.memory_space<vmem>>, vector<1x128xf32>
    %25 = vector.broadcast %24 : vector<1x128xf32> to vector<8x128xf32>
    %26 = arith.addf %23, %25 : vector<8x128xf32>
    %cst_16 = arith.constant 0.000000e+00 : f32
    %27 = vector.broadcast %cst_16 : f32 to vector<8x128xf32>
    %28 = arith.cmpf ogt, %26, %27 : vector<8x128xf32>
    %cst_17 = arith.constant 1.000000e+00 : f32
    %cst_18 = arith.constant 2.000000e-01 : f32
    %29 = vector.broadcast %cst_17 : f32 to vector<8x128xf32>
    %30 = vector.broadcast %cst_18 : f32 to vector<8x128xf32>
    %31 = arith.select %28, %29, %30 : vector<8x128xi1>, vector<8x128xf32>
    %32 = arith.mulf %31, %26 : vector<8x128xf32>
    %c0_19 = arith.constant 0 : index
    %c0_20 = arith.constant 0 : index
    %33 = vector.load %arg6[%c0_19, %c0_20] : memref<1x128xf32, #tpu.memory_space<vmem>>, vector<1x128xf32>
    %34 = vector.broadcast %33 : vector<1x128xf32> to vector<8x128xf32>
    %35 = arith.mulf %31, %34 : vector<8x128xf32>
    %c0_21 = arith.constant 0 : index
    %c0_22 = arith.constant 0 : index
    %36 = vector.load %arg7[%c0_21, %c0_22] : memref<128x128xf32, #tpu.memory_space<vmem>>, vector<128x128xf32>
    %cst_23 = arith.constant dense<0.000000e+00> : vector<8x128xf32>
    %37 = tpu.matmul %32, %36, %cst_23 {dimension_numbers = #tpu.dot_dimension_numbers<[1], [0], [0], [1], [0, 0, 1, 1], [], []>} : vector<8x128xf32>, vector<128x128xf32>, vector<8x128xf32> -> vector<8x128xf32>
    %c0_24 = arith.constant 0 : index
    %c0_25 = arith.constant 0 : index
    %38 = vector.load %arg8[%c0_24, %c0_25] : memref<1x128xf32, #tpu.memory_space<vmem>>, vector<1x128xf32>
    %39 = vector.broadcast %38 : vector<1x128xf32> to vector<8x128xf32>
    %40 = arith.addf %37, %39 : vector<8x128xf32>
    %c0_26 = arith.constant 0 : index
    %c0_27 = arith.constant 0 : index
    %41 = vector.load %arg7[%c0_26, %c0_27] : memref<128x128xf32, #tpu.memory_space<vmem>>, vector<128x128xf32>
    %cst_28 = arith.constant dense<0.000000e+00> : vector<8x128xf32>
    %42 = tpu.matmul %35, %41, %cst_28 {dimension_numbers = #tpu.dot_dimension_numbers<[1], [0], [0], [1], [0, 0, 1, 1], [], []>} : vector<8x128xf32>, vector<128x128xf32>, vector<8x128xf32> -> vector<8x128xf32>
    %cst_29 = arith.constant 0.000000e+00 : f32
    %43 = vector.broadcast %cst_29 : f32 to vector<8x128xf32>
    %44 = arith.cmpf ogt, %40, %43 : vector<8x128xf32>
    %cst_30 = arith.constant 1.000000e+00 : f32
    %cst_31 = arith.constant 2.000000e-01 : f32
    %45 = vector.broadcast %cst_30 : f32 to vector<8x128xf32>
    %46 = vector.broadcast %cst_31 : f32 to vector<8x128xf32>
    %47 = arith.select %44, %45, %46 : vector<8x128xi1>, vector<8x128xf32>
    %48 = arith.mulf %47, %40 : vector<8x128xf32>
    %49 = arith.mulf %47, %42 : vector<8x128xf32>
    %c0_32 = arith.constant 0 : index
    %c0_33 = arith.constant 0 : index
    %50 = vector.load %arg9[%c0_32, %c0_33] : memref<128x128xf32, #tpu.memory_space<vmem>>, vector<128x128xf32>
    %cst_34 = arith.constant dense<0.000000e+00> : vector<8x128xf32>
    %51 = tpu.matmul %48, %50, %cst_34 {dimension_numbers = #tpu.dot_dimension_numbers<[1], [0], [0], [1], [0, 0, 1, 1], [], []>} : vector<8x128xf32>, vector<128x128xf32>, vector<8x128xf32> -> vector<8x128xf32>
    %c0_35 = arith.constant 0 : index
    %c0_36 = arith.constant 0 : index
    %52 = vector.load %arg10[%c0_35, %c0_36] : memref<1x128xf32, #tpu.memory_space<vmem>>, vector<1x128xf32>
    %53 = vector.broadcast %52 : vector<1x128xf32> to vector<8x128xf32>
    %54 = arith.addf %51, %53 : vector<8x128xf32>
    %c0_37 = arith.constant 0 : index
    %c0_38 = arith.constant 0 : index
    %55 = vector.load %arg9[%c0_37, %c0_38] : memref<128x128xf32, #tpu.memory_space<vmem>>, vector<128x128xf32>
    %cst_39 = arith.constant dense<0.000000e+00> : vector<8x128xf32>
    %56 = tpu.matmul %49, %55, %cst_39 {dimension_numbers = #tpu.dot_dimension_numbers<[1], [0], [0], [1], [0, 0, 1, 1], [], []>} : vector<8x128xf32>, vector<128x128xf32>, vector<8x128xf32> -> vector<8x128xf32>
    %cst_40 = arith.constant 0.000000e+00 : f32
    %57 = vector.broadcast %cst_40 : f32 to vector<8x128xf32>
    %58 = arith.cmpf ogt, %54, %57 : vector<8x128xf32>
    %cst_41 = arith.constant 1.000000e+00 : f32
    %cst_42 = arith.constant 2.000000e-01 : f32
    %59 = vector.broadcast %cst_41 : f32 to vector<8x128xf32>
    %60 = vector.broadcast %cst_42 : f32 to vector<8x128xf32>
    %61 = arith.select %58, %59, %60 : vector<8x128xi1>, vector<8x128xf32>
    %62 = arith.mulf %61, %54 : vector<8x128xf32>
    %63 = arith.mulf %61, %56 : vector<8x128xf32>
    %c0_43 = arith.constant 0 : index
    %c0_44 = arith.constant 0 : index
    %64 = vector.load %arg11[%c0_43, %c0_44] : memref<128x4xf32, #tpu.memory_space<vmem>>, vector<128x4xf32>
    %cst_45 = arith.constant dense<0.000000e+00> : vector<8x4xf32>
    %65 = tpu.matmul %62, %64, %cst_45 {dimension_numbers = #tpu.dot_dimension_numbers<[1], [0], [0], [1], [0, 0, 1, 1], [], []>} : vector<8x128xf32>, vector<128x4xf32>, vector<8x4xf32> -> vector<8x4xf32>
    %c0_46 = arith.constant 0 : index
    %c0_47 = arith.constant 0 : index
    %66 = vector.load %arg12[%c0_46, %c0_47] : memref<1x4xf32, #tpu.memory_space<vmem>>, vector<1x4xf32>
    %67 = vector.broadcast %66 : vector<1x4xf32> to vector<8x4xf32>
    %68 = arith.addf %65, %67 : vector<8x4xf32>
    %c0_48 = arith.constant 0 : index
    %c0_49 = arith.constant 0 : index
    %69 = vector.load %arg11[%c0_48, %c0_49] : memref<128x4xf32, #tpu.memory_space<vmem>>, vector<128x4xf32>
    %cst_50 = arith.constant dense<0.000000e+00> : vector<8x4xf32>
    %70 = tpu.matmul %63, %69, %cst_50 {dimension_numbers = #tpu.dot_dimension_numbers<[1], [0], [0], [1], [0, 0, 1, 1], [], []>} : vector<8x128xf32>, vector<128x4xf32>, vector<8x4xf32> -> vector<8x4xf32>
    %71 = tpu.iota {dimensions = array<i32: 0>} : vector<8x1xi32>
    %72 = vector.broadcast %1 : i32 to vector<8x1xi32>
    %73 = arith.addi %72, %71 : vector<8x1xi32>
    %c8_i32_51 = arith.constant 8 : i32
    %74 = vector.broadcast %c8_i32_51 : i32 to vector<8x1xi32>
    %75 = arith.cmpi slt, %73, %74 : vector<8x1xi32>
    %76 = math.absf %70 : vector<8x4xf32>
    %cst_52 = arith.constant 1.000000e+00 : f32
    %77 = vector.shape_cast %75 : vector<8x1xi1> to vector<8x1xi1>
    %78 = vector.broadcast %77 : vector<8x1xi1> to vector<8x4xi1>
    %79 = vector.broadcast %cst_52 : f32 to vector<8x4xf32>
    %80 = arith.select %78, %76, %79 : vector<8x4xi1>, vector<8x4xf32>
    %81 = math.log %80 : vector<8x4xf32>
    %cst_53 = arith.constant dense<0.000000e+00> : vector<8xf32>
    %82 = vector.multi_reduction <add>, %81, %cst_53 [1] : vector<8x4xf32> to vector<8xf32>
    %83 = vector.shape_cast %82 : vector<8xf32> to vector<8x1xf32>
    %c0_54 = arith.constant 0 : index
    %c0_55 = arith.constant 0 : index
    %c0_56 = arith.constant 0 : index
    %84 = vector.load %arg13[%c0_54, %c0_55, %c0_56] : memref<1x8x4xf32, #tpu.memory_space<vmem>>, vector<1x8x4xf32>
    %85 = vector.shape_cast %84 : vector<1x8x4xf32> to vector<8x4xf32>
    %86 = vector.shape_cast %68 : vector<8x4xf32> to vector<1x8x4xf32>
    tpu.vector_store %arg13[%c0_54, %c0_55, %c0_56], %86 {strides = array<i32>} : memref<1x8x4xf32, #tpu.memory_space<vmem>>, vector<1x8x4xf32>,
    %c0_57 = arith.constant 0 : index
    %c0_58 = arith.constant 0 : index
    %c0_59 = arith.constant 0 : index
    %87 = vector.load %arg14[%c0_57, %c0_58, %c0_59] : memref<1x8x1xf32, #tpu.memory_space<vmem>>, vector<1x8x1xf32>
    %88 = vector.shape_cast %87 : vector<1x8x1xf32> to vector<8x1xf32>
    %89 = vector.shape_cast %83 : vector<8x1xf32> to vector<1x8x1xf32>
    tpu.vector_store %arg14[%c0_57, %c0_58, %c0_59], %89 {strides = array<i32>} : memref<1x8x1xf32, #tpu.memory_space<vmem>>, vector<1x8x1xf32>,
    return
  }
  func.func @transform_0(%arg0: i32, %arg1: i32) -> (i32, i32, i32) {
    %c0_i32 = arith.constant 0 : i32
    %c0_i32_0 = arith.constant 0 : i32
    %c0_i32_1 = arith.constant 0 : i32
    return %arg0, %c0_i32, %c0_i32_0 : i32, i32, i32
  }
  func.func @transform_1(%arg0: i32, %arg1: i32) -> (i32, i32, i32) {
    %c0_i32 = arith.constant 0 : i32
    %c0_i32_0 = arith.constant 0 : i32
    %c0_i32_1 = arith.constant 0 : i32
    %c0_i32_2 = arith.constant 0 : i32
    return %c0_i32, %c0_i32_0, %c0_i32_1 : i32, i32, i32
  }
  func.func @transform_2(%arg0: i32, %arg1: i32) -> (i32, i32) {
    %c0_i32 = arith.constant 0 : i32
    %c0_i32_0 = arith.constant 0 : i32
    %c0_i32_1 = arith.constant 0 : i32
    return %c0_i32, %c0_i32_0 : i32, i32
  }
  func.func @transform_3(%arg0: i32, %arg1: i32) -> (i32, i32) {
    %c0_i32 = arith.constant 0 : i32
    %c0_i32_0 = arith.constant 0 : i32
    %c0_i32_1 = arith.constant 0 : i32
    return %c0_i32, %c0_i32_0 : i32, i32
  }
  func.func @transform_4(%arg0: i32, %arg1: i32) -> (i32, i32) {
    %c0_i32 = arith.constant 0 : i32
    %c0_i32_0 = arith.constant 0 : i32
    %c0_i32_1 = arith.constant 0 : i32
    return %c0_i32, %c0_i32_0 : i32, i32
  }
  func.func @transform_5(%arg0: i32, %arg1: i32) -> (i32, i32) {
    %c0_i32 = arith.constant 0 : i32
    %c0_i32_0 = arith.constant 0 : i32
    %c0_i32_1 = arith.constant 0 : i32
    return %c0_i32, %c0_i32_0 : i32, i32
  }
  func.func @transform_6(%arg0: i32, %arg1: i32) -> (i32, i32) {
    %c0_i32 = arith.constant 0 : i32
    %c0_i32_0 = arith.constant 0 : i32
    %c0_i32_1 = arith.constant 0 : i32
    return %c0_i32, %c0_i32_0 : i32, i32
  }
  func.func @transform_7(%arg0: i32, %arg1: i32) -> (i32, i32) {
    %c0_i32 = arith.constant 0 : i32
    %c0_i32_0 = arith.constant 0 : i32
    %c0_i32_1 = arith.constant 0 : i32
    return %c0_i32, %c0_i32_0 : i32, i32
  }
  func.func @transform_8(%arg0: i32, %arg1: i32) -> (i32, i32) {
    %c0_i32 = arith.constant 0 : i32
    %c0_i32_0 = arith.constant 0 : i32
    %c0_i32_1 = arith.constant 0 : i32
    return %c0_i32, %c0_i32_0 : i32, i32
  }
  func.func @transform_9(%arg0: i32, %arg1: i32) -> (i32, i32) {
    %c0_i32 = arith.constant 0 : i32
    %c0_i32_0 = arith.constant 0 : i32
    %c0_i32_1 = arith.constant 0 : i32
    return %c0_i32, %c0_i32_0 : i32, i32
  }
  func.func @transform_10(%arg0: i32, %arg1: i32) -> (i32, i32) {
    %c0_i32 = arith.constant 0 : i32
    %c0_i32_0 = arith.constant 0 : i32
    %c0_i32_1 = arith.constant 0 : i32
    return %c0_i32, %c0_i32_0 : i32, i32
  }
  func.func @transform_11(%arg0: i32, %arg1: i32) -> (i32, i32, i32) {
    %c0_i32 = arith.constant 0 : i32
    %c0_i32_0 = arith.constant 0 : i32
    return %arg0, %arg1, %c0_i32 : i32, i32, i32
  }
  func.func @transform_12(%arg0: i32, %arg1: i32) -> (i32, i32, i32) {
    %c0_i32 = arith.constant 0 : i32
    %c0_i32_0 = arith.constant 0 : i32
    return %arg0, %arg1, %c0_i32 : i32, i32, i32
  }
}

</mosaic_0001>

<bundles_post_ra>
// kernel: squeeze.4
= control target key start
LH: loop header
LB: loop body
LE: loop exit
PB: predicated region body
PF: predicated region fallthrough
CT: control target
= control target key end

     0   :  { %s37_s8 = smov 32   ;;  %s38_s9 = smov 64   ;;  %vm7_vm0 = vcmask 261120   ;;  %vm13_vm1 = vcmask 1048320   ;;  %vm19_vm2 = vcmask 785920   ;;  %vm25_vm3 = vcmask 523520   ;;  %s55_s0 = inlined_call_operand.vmem [shape: f32[4,32,1], index: 0, kind: input, shape index: {}]   ;;  %s56_s1 = inlined_call_operand.vmem [shape: f32[1,128], index: 1, kind: output, shape index: {}]  }
   0x1   :  { %v4_v0 = vld [vmem:[%s55_s0] sm:$0xf]  ;;  %s36_s0 = smov 96  }
   0x2   :  { %5 = vst [vmem:[#allocation1] sm:$0xf] %v4_v0 }
   0x9   :  { %v10_v1 = vld [vmem:[#allocation1 + $0x3] sm:$0x1]   ;;  %v22_v2 = vld [vmem:[#allocation1 + $0x1] sm:$0x1]   ;;  %v16_v3 = vld [vmem:[#allocation1 + $0x2] sm:$0x1]  }
   0xa   :  { %11 = vrot.lane.b32.xlu0 %v10_v1, %s36_s0  ;;  %23 = vrot.lane.b32.xlu1 %v22_v2, %s37_s8  ;;  %v6_v4 = vld [vmem:[#allocation1] sm:$0x1]  }
   0xb   :  { %8 = vst.msk [vmem:[#allocation0] sm:$0x1] %vm7_vm0, %v6_v4  }
  0x12   :  { %17 = vrot.lane.b32.xlu0 %v16_v3, %s38_s9 }
  0x7c   :  { %v12_v5 = vpop.permute.xlu0 %11   ;;  %v24_v6 = vpop.permute.xlu1 %23  }
  0x7d   :  { %14 = vst.msk [vmem:[#allocation0] sm:$0x1] %vm13_vm1, %v12_v5  }
  0x84   :  { %v18_v7 = vpop.permute.xlu0 %17  }
  0x85   :  { %20 = vst.msk [vmem:[#allocation0] sm:$0x1] %vm19_vm2, %v18_v7  }
  0x86   :  { %26 = vst.msk [vmem:[#allocation0] sm:$0x1] %vm25_vm3, %v24_v6  }
  0x8d   :  { %v29_v8 = vld [vmem:[#allocation0] sm:$0x1] }
  0x8e   :  { %32 = vst [vmem:[%s56_s1] sm:$0x1] %v29_v8 }

// kernel: np_transition_prior_forward.1
= control target key start
LH: loop header
LB: loop body
LE: loop exit
PB: predicated region body
PF: predicated region fallthrough
CT: control target
= control target key end

     0   :  { %s1026_s21 = smov 0   ;;  %s1028_s22 = smov 0   ;;  %s1242_s0 = inlined_call_operand.vmem [shape: f32[2,10,4], index: 0, kind: input, shape index: {}]   ;;  %s1243_s1 = inlined_call_operand.vmem [shape: f32[2,4,128], index: 1, kind: input, shape index: {}]   ;;  %s1244_s2 = inlined_call_operand.vmem [shape: f32[4,128], index: 2, kind: input, shape index: {}]   ;;  %s1245_s3 = inlined_call_operand.vmem [shape: f32[1,128], index: 3, kind: input, shape index: {}]   ;;  %s1246_s4 = inlined_call_operand.vmem [shape: f32[1,128], index: 4, kind: input, shape index: {}]   ;;  %s1247_s5 = inlined_call_operand.vmem [shape: f32[128,128], index: 5, kind: input, shape index: {}]   ;;  %s1248_s6 = inlined_call_operand.vmem [shape: f32[1,128], index: 6, kind: input, shape index: {}]   ;;  %s1249_s7 = inlined_call_operand.vmem [shape: f32[128,128], index: 7, kind: input, shape index: {}]   ;;  %s1250_s8 = inlined_call_operand.vmem [shape: f32[1,128], index: 8, kind: input, shape index: {}]   ;;  %s1251_s9 = inlined_call_operand.vmem [shape: f32[128,4], index: 9, kind: input, shape index: {}]   ;;  %s1252_s10 = inlined_call_operand.vmem [shape: f32[1,4], index: 10, kind: input, shape index: {}]   ;;  %s1253_s11 = inlined_call_operand.vmem [shape: f32[2,8,4], index: 11, kind: output, shape index: {0}]   ;;  %s1254_s12 = inlined_call_operand.vmem [shape: f32[2,8,1], index: 12, kind: output, shape index: {1}]  }
   0x1   :  { %s1030_s23 = smov 0  }
   0x2 LB: > { %s35_s24 = sadd.s32 1, %s954_s22  ;;  %p887_p0 = scmp.ge.s32.totalorder %s958_s23, 1  ;;  %s958_s23 = sphi %s1030_s23, %s23_s23   ;;  %s954_s22 = sphi %s1028_s22, %s1256_s22   ;;  %s950_s21 = sphi %s1026_s21, %s1255_s21  }
   0x3   : > { %p37_p1 = scmp.ge.s32.totalorder %s35_s24, 2  ;;  %p381_p2 = scmp.lt.s32.totalorder %s958_s23, 3 }
   0x5   : > { %s1258_s24 = smov (%p37_p1, %s35_s24), 0  ;;  %p382_p3 = pnand %p887_p0, %p381_p2 }
   0x6   : > { %p432_p4 = scmp.lt.s32.totalorder (!%p382_p3), %s950_s21, 1 }
   0x7   : > { %385 = sbr.rel (%p382_p3) target bundleno = 688 (0x2b0), region = 64 }
   0xc   : > { %v458_v0 = vld [vmem:[%s1243_s1] sm:$0xf]  ;;  %vm463_vm0 = vcmask 1043456   ;;  %v573_v1 = vld [vmem:[%s1247_s5 + $0x78] sm:$0xff]  ;;  %v898_v3 = vld [vmem:[%s1243_s1 + $0x4] sm:$0xf] }
   0xd   : > { %893 = vmatpush.msk.msra.mxu1 %vm463_vm0, %v458_v0  ;;  %v455_v2 = vld [vmem:[%s1244_s2] sm:$0xf]  ;;  %578 = vmatpush.msra.mxu3 %v573_v1  ;;  %v572_v4 = vld [vmem:[%s1247_s5 + $0x70] sm:$0xff]  ;;  %s1260_s21 = smov (!%p432_p4, %s950_s21), 1  ;;  %v571_v5 = vld [vmem:[%s1247_s5 + $0x68] sm:$0xff]  ;;  %vm459_vm1 = vcmask 31744  }
   0xe   : > { %899 = vmatpush.msk.msra.mxu2 %vm463_vm0, %v898_v3  ;;  %598 = vmatpush.msra.mxu0 %v573_v1  ;;  %s903_s19 = sshll.u32 %s1260_s21, 4  ;;  %v570_v6 = vld [vmem:[%s1247_s5 + $0x60] sm:$0xff]  ;;  %v569_v9 = vld [vmem:[%s1247_s5 + $0x58] sm:$0xff]  ;;  %v568_v10 = vld [vmem:[%s1247_s5 + $0x50] sm:$0xff]  ;;  %v960_v39 = vmov 0.2  }
   0xf   : > { %895 = vmatpush.msk.msrb.mxu1 %vm463_vm0, %v455_v2  ;;  %579 = vmatpush.msra.mxu3 %v572_v4  ;;  %s436_s26 = scalar_lea.vmem %s1242_s0, %s903_s19  ;;  %v567_v12 = vld [vmem:[%s1247_s5 + $0x48] sm:$0xff]  ;;  %v566_v13 = vld [vmem:[%s1247_s5 + $0x40] sm:$0xff]  ;;  %v565_v14 = vld [vmem:[%s1247_s5 + $0x38] sm:$0xff]  ;;  %s890_s27 = sshll.u32 %s1260_s21, 3  ;;  %vm761_vm5 = vcmask 7168  }
  0x10   : > { %599 = vmatpush.msra.mxu0 %v572_v4  ;;  %v457_v7 = vld [vmem:[%s436_s26] sm:$0xff]  ;;  %v564_v15 = vld [vmem:[%s1247_s5 + $0x30] sm:$0xff]  ;;  %v563_v16 = vld [vmem:[%s1247_s5 + $0x28] sm:$0xff]  ;;  %s443_s14 = scalar_lea.vmem %s1253_s11, %s890_s27  ;;  %s450_s16 = scalar_lea.vmem %s1254_s12, %s890_s27 }
  0x11   : > { %580 = vmatpush.msra.mxu3 %v571_v5  ;;  %v897_v8 = vld [vmem:[%s436_s26 + $0x1] sm:$0xff]  ;;  %894 = vmatmul.msk.f32.vlgmr.msra.gmra.mxu1 %vm459_vm1, %v457_v7  ;;  %v561_v18 = vld [vmem:[%s1247_s5 + $0x18] sm:$0xff]  ;;  %v560_v19 = vld [vmem:[%s1247_s5 + $0x10] sm:$0xff] }
  0x12   : > { %900 = vmatmul.msk.f32.vlgmr.msra.gmra.mxu2 %vm459_vm1, %v897_v8  ;;  %600 = vmatpush.msra.mxu0 %v571_v5  ;;  %v892_v11 = vld [vmem:[%s436_s26 + $0x2] sm:$0xff]  ;;  %v637_v22 = vld [vmem:[%s1249_s7 + $0x78] sm:$0xff]  ;;  %v636_v23 = vld [vmem:[%s1249_s7 + $0x70] sm:$0xff] }
  0x13   : > { %581 = vmatpush.msra.mxu3 %v570_v6  ;;  %v562_v17 = vld [vmem:[%s1247_s5 + $0x20] sm:$0xff]  ;;  %v559_v20 = vld [vmem:[%s1247_s5 + $0x8] sm:$0xff]  ;;  %642 = vmatpush.msra.mxu1 %v637_v22  ;;  %v633_v26 = vld [vmem:[%s1249_s7 + $0x58] sm:$0xff] }
  0x14   : > { %601 = vmatpush.msra.mxu0 %v570_v6  ;;  %v558_v21 = vld [vmem:[%s1247_s5] sm:$0xff]  ;;  %662 = vmatpush.msrb.mxu2 %v637_v22  ;;  %v635_v24 = vld [vmem:[%s1249_s7 + $0x68] sm:$0xff]  ;;  %v632_v27 = vld [vmem:[%s1249_s7 + $0x50] sm:$0xff] }
  0x15   : > { %582 = vmatpush.msra.mxu3 %v569_v9  ;;  %643 = vmatpush.msra.mxu1 %v636_v23  ;;  %v634_v25 = vld [vmem:[%s1249_s7 + $0x60] sm:$0xff]  ;;  %v631_v28 = vld [vmem:[%s1249_s7 + $0x48] sm:$0xff]  ;;  %v629_v31 = vld [vmem:[%s1249_s7 + $0x38] sm:$0xff] }
  0x16   : > { %602 = vmatpush.msra.mxu0 %v569_v9  ;;  %663 = vmatpush.msrb.mxu2 %v636_v23  ;;  %v630_v29 = vld [vmem:[%s1249_s7 + $0x40] sm:$0xff]  ;;  %v628_v43 = vld [vmem:[%s1249_s7 + $0x30] sm:$0xff]  ;;  %v627_v44 = vld [vmem:[%s1249_s7 + $0x28] sm:$0xff] }
  0x17   : > { %583 = vmatpush.msra.mxu3 %v568_v10  ;;  %644 = vmatpush.msra.mxu1 %v635_v24  ;;  %v929_v35 = vld [vmem:[%s1245_s3] ss:$0 sm:$0xff]  ;;  %v625_v46 = vld [vmem:[%s1249_s7 + $0x18] sm:$0xff]  ;;  %v624_v47 = vld [vmem:[%s1249_s7 + $0x10] sm:$0xff] }
  0x18   : > { %603 = vmatpush.msra.mxu0 %v568_v10  ;;  %664 = vmatpush.msrb.mxu2 %v635_v24  ;;  %v930_v38 = vld [vmem:[%s1246_s4] ss:$0 sm:$0xff]  ;;  %v623_v48 = vld [vmem:[%s1249_s7 + $0x8] sm:$0xff]  ;;  %v701_v50 = vld [vmem:[%s1251_s9 + $0x78] sm:$0xff] }
  0x19   : > { %896 = vmatmul.msk.f32.vlgmr.msrb.gmra.mxu1 %vm459_vm1, %v892_v11  ;;  %584 = vmatpush.msra.mxu3 %v567_v12  ;;  %v626_v45 = vld [vmem:[%s1249_s7 + $0x20] sm:$0xff]  ;;  %v700_v51 = vld [vmem:[%s1251_s9 + $0x70] sm:$0xff]  ;;  %v699_v52 = vld [vmem:[%s1251_s9 + $0x68] sm:$0xff] }
  0x1a   : > { %604 = vmatpush.msra.mxu0 %v567_v12  ;;  %645 = vmatpush.msra.mxu1 %v634_v25  ;;  %v622_v49 = vld [vmem:[%s1249_s7] sm:$0xff]  ;;  %v697_v54 = vld [vmem:[%s1251_s9 + $0x58] sm:$0xff]  ;;  %v696_v55 = vld [vmem:[%s1251_s9 + $0x50] sm:$0xff] }
  0x1b   : > { %585 = vmatpush.msra.mxu3 %v566_v13  ;;  %665 = vmatpush.msrb.mxu2 %v634_v25  ;;  %v698_v53 = vld [vmem:[%s1251_s9 + $0x60] sm:$0xff]  ;;  %v695_v56 = vld [vmem:[%s1251_s9 + $0x48] sm:$0xff]  ;;  %v693_v58 = vld [vmem:[%s1251_s9 + $0x38] sm:$0xff] }
  0x1c   : > { %605 = vmatpush.msra.mxu0 %v566_v13  ;;  %646 = vmatpush.msra.mxu1 %v633_v26  ;;  %v694_v57 = vld [vmem:[%s1251_s9 + $0x40] sm:$0xff]  ;;  %v692_v59 = vld [vmem:[%s1251_s9 + $0x30] sm:$0xff]  ;;  %v691_v60 = vld [vmem:[%s1251_s9 + $0x28] sm:$0xff] }
  0x1d   : > { %586 = vmatpush.msra.mxu3 %v565_v14  ;;  %666 = vmatpush.msrb.mxu2 %v633_v26  ;;  %v690_v61 = vld [vmem:[%s1251_s9 + $0x20] sm:$0xff]  ;;  %v689_v5 = vld [vmem:[%s1251_s9 + $0x18] sm:$0xff]  ;;  %v688_v6 = vld [vmem:[%s1251_s9 + $0x10] sm:$0xff] }
  0x1e   : > { %606 = vmatpush.msra.mxu0 %v565_v14  ;;  %647 = vmatpush.msra.mxu1 %v632_v27  ;;  %v931_v62 = vld [vmem:[%s1248_s6] ss:$0 sm:$0xff]  ;;  %v687_v7 = vld [vmem:[%s1251_s9 + $0x8] sm:$0xff] }
  0x1f   : > { %587 = vmatpush.msra.mxu3 %v564_v15  ;;  %667 = vmatpush.msrb.mxu2 %v632_v27  ;;  %v686_v8 = vld [vmem:[%s1251_s9] sm:$0xff] }
  0x20   : > { %607 = vmatpush.msra.mxu0 %v564_v15  ;;  %648 = vmatpush.msra.mxu1 %v631_v28  ;;  %v932_v9 = vld [vmem:[%s1250_s8] ss:$0 sm:$0xff] }
  0x21   : > { %588 = vmatpush.msra.mxu3 %v563_v16  ;;  %668 = vmatpush.msrb.mxu2 %v631_v28 }
  0x22   : > { %608 = vmatpush.msra.mxu0 %v563_v16  ;;  %649 = vmatpush.msra.mxu1 %v630_v29 }
  0x23   : > { %589 = vmatpush.msra.mxu3 %v562_v17  ;;  %669 = vmatpush.msrb.mxu2 %v630_v29 }
  0x24   : > { %609 = vmatpush.msra.mxu0 %v562_v17  ;;  %650 = vmatpush.msra.mxu1 %v629_v31 }
  0x25   : > { %590 = vmatpush.msra.mxu3 %v561_v18  ;;  %670 = vmatpush.msrb.mxu2 %v629_v31 }
  0x26   : > { %610 = vmatpush.msra.mxu0 %v561_v18  ;;  %651 = vmatpush.msra.mxu1 %v628_v43  ;;  %v933_v18 = vld [vmem:[%s1252_s10] ss:$0 sm:$0xff] }
  0x27   : > { %591 = vmatpush.msra.mxu3 %v560_v19  ;;  %671 = vmatpush.msrb.mxu2 %v628_v43 }
  0x28   : > { %611 = vmatpush.msra.mxu0 %v560_v19  ;;  %652 = vmatpush.msra.mxu1 %v627_v44 }
  0x29   : > { %592 = vmatpush.msra.mxu3 %v559_v20  ;;  %672 = vmatpush.msrb.mxu2 %v627_v44 }
  0x2a   : > { %612 = vmatpush.msra.mxu0 %v559_v20  ;;  %653 = vmatpush.msra.mxu1 %v626_v45 }
  0x2b   : > { %593 = vmatpush.msra.mxu3 %v558_v21  ;;  %673 = vmatpush.msrb.mxu2 %v626_v45 }
  0x2c   : > { %613 = vmatpush.msra.mxu0 %v558_v21  ;;  %654 = vmatpush.msra.mxu1 %v625_v46 }
  0x2d   : > { %674 = vmatpush.msrb.mxu2 %v625_v46  ;;  %706 = vmatpush.msrb.mxu3 %v701_v50 }
  0x2e   : > { %655 = vmatpush.msra.mxu1 %v624_v47  ;;  %726 = vmatpush.msrb.mxu0 %v701_v50 }
  0x2f   : > { %675 = vmatpush.msrb.mxu2 %v624_v47  ;;  %707 = vmatpush.msrb.mxu3 %v700_v51 }
  0x30   : > { %656 = vmatpush.msra.mxu1 %v623_v48  ;;  %727 = vmatpush.msrb.mxu0 %v700_v51 }
  0x31   : > { %676 = vmatpush.msrb.mxu2 %v623_v48  ;;  %708 = vmatpush.msrb.mxu3 %v699_v52 }
  0x32   : > { %657 = vmatpush.msra.mxu1 %v622_v49  ;;  %728 = vmatpush.msrb.mxu0 %v699_v52 }
  0x33   : > { %677 = vmatpush.msrb.mxu2 %v622_v49  ;;  %709 = vmatpush.msrb.mxu3 %v698_v53 }
  0x34   : > { %729 = vmatpush.msrb.mxu0 %v698_v53 }
  0x35   : > { %710 = vmatpush.msrb.mxu3 %v697_v54 }
  0x36   : > { %730 = vmatpush.msrb.mxu0 %v697_v54 }
  0x37   : > { %711 = vmatpush.msrb.mxu3 %v696_v55 }
  0x38   : > { %731 = vmatpush.msrb.mxu0 %v696_v55 }
  0x39   : > { %712 = vmatpush.msrb.mxu3 %v695_v56 }
  0x3a   : > { %732 = vmatpush.msrb.mxu0 %v695_v56 }
  0x3b   : > { %713 = vmatpush.msrb.mxu3 %v694_v57 }
  0x3c   : > { %733 = vmatpush.msrb.mxu0 %v694_v57 }
  0x3d   : > { %714 = vmatpush.msrb.mxu3 %v693_v58 }
  0x3e   : > { %734 = vmatpush.msrb.mxu0 %v693_v58 }
  0x3f   : > { %715 = vmatpush.msrb.mxu3 %v692_v59 }
  0x40   : > { %735 = vmatpush.msrb.mxu0 %v692_v59 }
  0x41   : > { %716 = vmatpush.msrb.mxu3 %v691_v60 }
  0x42   : > { %736 = vmatpush.msrb.mxu0 %v691_v60 }
  0x43   : > { %717 = vmatpush.msrb.mxu3 %v690_v61 }
  0x44   : > { %737 = vmatpush.msrb.mxu0 %v690_v61 }
  0x45   : > { %718 = vmatpush.msrb.mxu3 %v689_v5 }
  0x46   : > { %738 = vmatpush.msrb.mxu0 %v689_v5 }
  0x47   : > { %719 = vmatpush.msrb.mxu3 %v688_v6 }
  0x48   : > { %739 = vmatpush.msrb.mxu0 %v688_v6 }
  0x49   : > { %720 = vmatpush.msrb.mxu3 %v687_v7 }
  0x4a   : > { %740 = vmatpush.msrb.mxu0 %v687_v7 }
  0x4b   : > { %721 = vmatpush.msrb.mxu3 %v686_v8 }
  0x4c   : > { %741 = vmatpush.msrb.mxu0 %v686_v8 }
  0x8e   : > { %v484_v30 = vpop.f32.mrf.mxu1 }
  0x95   : > { %v541_v33 = vpop.f32.mrf.mxu2 }
  0x96   : > { %v510_v32 = vpop.f32.mrf.mxu1 }
  0x97   : > { %v511_v34 = vadd.f32 %v510_v32, %v484_v30 }
  0x99   : > { %v544_v36 = vadd.f32 %v541_v33, %v511_v34 }
  0x9b   : > { %v549_v37 = vadd.f32 %v929_v35, %v544_v36 }
  0x9d   : > { %vm550_vm2 = vcmp.gt.f32.partialorder %v549_v37, 0.0 }
  0x9e   : > { %v551_v40 = vsel %vm550_vm2, 1.0, %v960_v39 }
  0x9f   : > { %v552_v41 = vmul.f32 %v551_v40, %v549_v37  ;;  %v557_v42 = vmul.f32 %v930_v38, %v551_v40 }
  0xa1   : > { %594 = vmatmul.f32.vlgmr.msra.gmra.mxu3 %v552_v41  ;;  %614 = vmatmul.f32.vlgmr.msra.gmra.mxu0 %v557_v42 }
 0x11e   : > { %v615_v1 = vpop.f32.mrf.mxu0 }
 0x124   : > { %v595_v63 = vpop.f32.mrf.mxu3 }
 0x125   : > { %v596_v0 = vadd.f32 %v931_v62, %v595_v63 }
 0x127   : > { %vm618_vm3 = vcmp.gt.f32.partialorder %v596_v0, 0.0 }
 0x128   : > { %v619_v2 = vsel %vm618_vm3, 1.0, %v960_v39 }
 0x129   : > { %v620_v3 = vmul.f32 %v619_v2, %v596_v0  ;;  %v621_v4 = vmul.f32 %v619_v2, %v615_v1 }
 0x12b   : > { %658 = vmatmul.f32.vlgmr.msra.gmra.mxu1 %v620_v3  ;;  %678 = vmatmul.f32.vlgmr.msrb.gmra.mxu2 %v621_v4 }
 0x1a8   : > { %v659_v10 = vpop.f32.mrf.mxu1 }
 0x1a9   : > { %v660_v11 = vadd.f32 %v932_v9, %v659_v10 }
 0x1ab   : > { %vm682_vm4 = vcmp.gt.f32.partialorder %v660_v11, 0.0 }
 0x1ac   : > { %v683_v12 = vsel %vm682_vm4, 1.0, %v960_v39 }
 0x1ad   : > { %v684_v13 = vmul.f32 %v683_v12, %v660_v11 }
 0x1ae   : > { %v679_v14 = vpop.f32.mrf.mxu2 }
 0x1af   : > { %v685_v15 = vmul.f32 %v683_v12, %v679_v14  ;;  %722 = vmatmul.f32.vlgmr.msrb.gmra.mxu3 %v684_v13 }
 0x1b1   : > { %742 = vmatmul.f32.vlgmr.msrb.gmra.mxu0 %v685_v15 }
 0x22e   : > { %v743_v16 = vpop.f32.mrf.mxu0 }
 0x22f   : > { %v751_v17 = vand.u32 2147483647, %v743_v16 }
 0x231   : > { %934 = vlog2.f32 %v751_v17 }
 0x232   : > { %v723_v19 = vpop.f32.mrf.mxu3 }
 0x233   : > { %v724_v20 = vadd.f32 %v933_v18, %v723_v19 }
 0x235   : > { %760 = vst.msk [vmem:[%s443_s14] sm:$0xff] %vm459_vm1, %v724_v20 }
 0x237   : > { %v935_v21 = vpop.eup %934 }
 0x238   : > { %v756_v22 = vmul.f32 0.6931472, %v935_v21 }
 0x23a   : > { %v757_v23 = vsel %vm459_vm1, %v756_v22, 0.0 }
 0x23b   : > { %758 = vadd.xlane.f32.xlu0 %v757_v23 }
 0x2ae   : > { %v759_v24 = vpop.xlane.xlu0 %758 }
 0x2af   : > { %762 = vst.msk [vmem:[%s450_s16] sm:$0xff] %vm761_vm5, %v759_v24 }
 0x2b0 PF: > { %s23_s23 = sadd.s32 1, %s958_s23   ;;  %s1255_s21 = smov %s954_s22 }
 0x2b1   : > { %p20_p5 = scmp.ge.s32.totalorder %s23_s23, 4   ;;  %s1256_s22 = smov %s1258_s24 }
 0x2b3   :  { %22 = sbr.rel (!%p20_p5) target bundleno = 2 (0x2), region = 110 }

</bundles_post_ra>
